<compile_context>
chip_gen: v6e
topology: v6e:2x2x1
jax: 0.10.0
libtpu: 0.0.40
codegen_flags: <defaults>
</compile_context>

<pallas_src>
import functools

import jax
import jax.numpy as jnp
from jax.experimental import pallas as pl
from jax.experimental.pallas import tpu as pltpu


def _round_up(x: int, m: int) -> int:
    return ((x + m - 1) // m) * m


def make_sinusoidal_pos_emb(max_len: int, embedding_size: int) -> jnp.ndarray:
    """Replicates the PyTorch __init__ sinusoidal table construction."""
    pos = jnp.arange(0, max_len, dtype=jnp.float32)[:, None]            # (max_len, 1)
    _2i = jnp.arange(0, embedding_size, 2, dtype=jnp.float32)           # (E/2,)
    angle = pos / jnp.power(10000.0, _2i / embedding_size)              # (max_len, E/2)
    pos_emb = jnp.zeros((max_len, embedding_size), dtype=jnp.float32)
    pos_emb = pos_emb.at[:, 0::2].set(jnp.sin(angle))
    pos_emb = pos_emb.at[:, 1::2].set(jnp.cos(angle))
    return pos_emb


# --------------------------------------------------------------------------------------------
# Fast path: embedding table resident in VMEM, gather via dynamic sublane indexing.
# --------------------------------------------------------------------------------------------
def _vmem_gather_kernel(ids_ref,      # SMEM (B*T_pad,) int32  -- scalar-prefetched token ids
                        pos_ref,      # VMEM (T_pad, E) f32    -- resident positional slice
                        tok_ref,      # VMEM (V, E)            -- resident embedding table
                        out_ref,      # VMEM (G, E) f32        -- output block
                        *, tokens_per_step: int, t_chunks: int):
    G = tokens_per_step
    c = pl.program_id(0)
    base = c * G

    # Gather G rows with dynamic first-axis indexing on the VMEM-resident table.
    # TODO(synk): for very large G (>512) switch this unrolled loop to lax.fori_loop to bound
    # code size.
    for g in range(G):
        tok_id = ids_ref[base + g]
        out_ref[pl.ds(g, 1), :] = tok_ref[pl.ds(tok_id, 1), :].astype(jnp.float32)

    # Single vectorized positional add over the whole lane/sublane-dense (G, E) block.
    pos_base = pl.multiple_of((c % t_chunks) * G, G)
    out_ref[...] += pos_ref[pl.ds(pos_base, G), :]


# --------------------------------------------------------------------------------------------
# General path: table stays in HBM; per-row gather DMAs, double-buffered with one-step lookahead.
# --------------------------------------------------------------------------------------------
def _dma_gather_kernel(ids_ref,       # SMEM (B*T_pad,) int32
                       pos_ref,       # VMEM (T_pad, E) f32    -- resident positional slice
                       tok_hbm_ref,   # HBM  (V, E)            -- never staged whole
                       out_ref,       # VMEM (G, E) f32
                       rows_vmem,     # VMEM (2, G, E) scratch -- double-buffered gathered rows
                       copy_sems,     # DMA semaphores (2, G)
                       *, tokens_per_step: int, t_chunks: int):
    G = tokens_per_step
    c = pl.program_id(0)
    nc = pl.num_programs(0)
    slot = c % 2

    def issue(chunk, slot_idx):
        base = chunk * G
        # All SMEM scalar id reads happen here, strictly before any .wait() below.
        for g in range(G):
            row = ids_ref[base + g]
            pltpu.make_async_copy(tok_hbm_ref.at[row],
                                  rows_vmem.at[slot_idx, g],
                                  copy_sems.at[slot_idx, g]).start()

    # Prime the pipeline on the very first chunk.
    @pl.when(c == 0)
    def _():
        issue(0, 0)

    # One-step lookahead: start chunk c+1's gathers before waiting on chunk c's, so the HBM
    # gather latency hides under this step's add + output writeback.
    @pl.when(c + 1 < nc)
    def _():
        issue(c + 1, 1 - slot)

    # Wait for this chunk's G row copies (issued at step c-1, or just above for c == 0).
    # Per-row semaphores keep the waits exact; a single shared-sem wait per slot would shave a
    # few scalar slots but is kept simple/robust here.
    for g in range(G):
        pltpu.make_async_copy(tok_hbm_ref.at[0],
                              rows_vmem.at[slot, g],
                              copy_sems.at[slot, g]).wait()

    # Vectorized positional add on the VPU; single lane/sublane-dense (G, E) store.
    pos_base = pl.multiple_of((c % t_chunks) * G, G)
    out_ref[...] = rows_vmem[slot].astype(jnp.float32) + pos_ref[pl.ds(pos_base, G), :]


# --------------------------------------------------------------------------------------------
# Wrapper
# --------------------------------------------------------------------------------------------
def token_embedding(x_ids: jnp.ndarray,
                    tok_table: jnp.ndarray,
                    pos_table: jnp.ndarray,
                    *,
                    g_target: int = 256,
                    table_vmem_budget_bytes: int = 16 * 1024 * 1024) -> jnp.ndarray:
    """x_ids: (B, T) int32; tok_table: (V, E); pos_table: (max_len, E) f32 -> (B, T, E) f32."""
    B, T = x_ids.shape
    V, E = tok_table.shape
    max_len = pos_table.shape[0]
    assert T <= max_len, f"sequence length {T} exceeds max_len {max_len}"

    itemsize = jnp.dtype(tok_table.dtype).itemsize

    # Token chunk per grid step: as large as the (padded) sequence allows, up to g_target.
    # Padding T (instead of shrinking G) keeps performance independent of T divisibility.
    G = min(g_target, _round_up(T, 8))
    T_pad = _round_up(T, G)
    t_chunks = T_pad // G
    num_chunks = B * t_chunks

    # Clamp ids (safety vs OOB DMA / OOB dynamic index) and pad to the chunked layout with a
    # valid id (0); padded rows are sliced off at the end.
    ids = jnp.clip(x_ids.astype(jnp.int32), 0, V - 1)
    ids_flat = jnp.pad(ids, ((0, 0), (0, T_pad - T))).reshape(B * T_pad)

    pos_pad = jnp.zeros((T_pad, E), jnp.float32).at[:T].set(pos_table[:T].astype(jnp.float32))

    use_vmem_table = (V * E * itemsize) <= table_vmem_budget_bytes

    pos_spec = pl.BlockSpec((T_pad, E), lambda c, ids: (0, 0))        # resident, fetched once
    out_spec = pl.BlockSpec((G, E), lambda c, ids: (c, 0))            # lane-dense output blocks
    out_shape = jax.ShapeDtypeStruct((B * T_pad, E), jnp.float32)

    if use_vmem_table:
        kernel = functools.partial(_vmem_gather_kernel, tokens_per_step=G, t_chunks=t_chunks)
        table_spec = pl.BlockSpec((V, E), lambda c, ids: (0, 0))      # whole table resident
        scratch = []
        dim_sem = ("parallel",)          # stateless per step -> safe to shard across TCs
        table_vmem = 2 * V * E * itemsize
    else:
        kernel = functools.partial(_dma_gather_kernel, tokens_per_step=G, t_chunks=t_chunks)
        table_spec = pl.BlockSpec(memory_space=pl.ANY)                # stay in HBM, manual DMA
        scratch = [pltpu.VMEM((2, G, E), tok_table.dtype),
                   pltpu.SemaphoreType.DMA((2, G))]
        dim_sem = ("arbitrary",)         # lookahead state in scratch spans grid steps
        table_vmem = 2 * G * E * itemsize

    # Explicit scoped-VMEM limit so larger G / resident blocks don't hit the default cap.
    vmem_need = 2 * G * E * 4 + 2 * T_pad * E * 4 + table_vmem
    try:
        phys_vmem = pltpu.get_tpu_info().vmem_capacity_bytes
    except Exception:
        phys_vmem = 64 * 1024 * 1024
    vmem_limit = int(min(max(2 * vmem_need, 32 * 1024 * 1024), phys_vmem - 8 * 1024 * 1024))

    cost = pl.CostEstimate(
        flops=B * T_pad * E,                                   # the positional add
        transcendentals=0,
        bytes_accessed=(B * T_pad * E * itemsize               # table rows gathered
                        + T_pad * E * 4                        # pos slice, fetched once
                        + B * T_pad * E * 4                    # output writeback
                        + B * T_pad * 4),                      # ids
    )

    out_flat = pl.pallas_call(
        kernel,
        out_shape=out_shape,
        grid_spec=pltpu.PrefetchScalarGridSpec(
            num_scalar_prefetch=1,            # ids -> SMEM, drive gather addressing
            grid=(num_chunks,),
            in_specs=[pos_spec, table_spec],
            out_specs=out_spec,
            scratch_shapes=scratch,
        ),
        compiler_params=pltpu.CompilerParams(
            dimension_semantics=dim_sem,
            vmem_limit_bytes=vmem_limit),
        cost_estimate=cost,
    )(ids_flat, pos_pad, tok_table)

    return out_flat.reshape(B, T_pad, E)[:, :T, :]


if __name__ == "__main__":
    # Small synthetic shapes consistent with the module's forward.
    VOCAB = 32
    EMB = 128          # multiple of 128 -> lane-dense output stores
    MAX_LEN = 16
    B, T = 2, 8

    key = jax.random.PRNGKey(0)
    k_ids, k_tbl = jax.random.split(key)

    # Deterministic parameter init: nn.Embedding default is N(0, 1).
    tok_table = jax.random.normal(k_tbl, (VOCAB, EMB), dtype=jnp.float32)
    pos_table = make_sinusoidal_pos_emb(MAX_LEN, EMB)

    # Deterministic example input token ids (all in-range).
    x_ids = jax.random.randint(k_ids, (B, T), 0, VOCAB, dtype=jnp.int32)

    # Pure-JAX reference.
    ref = jnp.take(tok_table, x_ids, axis=0) + pos_table[:T, :][None, :, :]

    # Exercise both paths: VMEM-resident-table fast path (default for this tiny table) and the
    # HBM DMA-gather path (forced by a zero table budget).
    out_fast = token_embedding(x_ids, tok_table, pos_table)
    out_dma = token_embedding(x_ids, tok_table, pos_table, table_vmem_budget_bytes=0)
    out_fast, out_dma = jax.block_until_ready((out_fast, out_dma))

    assert out_fast.shape == (B, T, EMB)
    assert out_dma.shape == (B, T, EMB)
    assert jnp.allclose(out_fast, ref, atol=1e-5, rtol=1e-5)
    assert jnp.allclose(out_dma, ref, atol=1e-5, rtol=1e-5)

    print("KERNEL_OK")
</pallas_src>

<mosaic_0001>
module attributes {stable_mosaic.version = 11 : i64} {
  func.func @_vmem_gather_kernel(%arg0: i32, %arg1: memref<16xi32, #tpu.memory_space<smem>>, %arg2: memref<8x128xf32, #tpu.memory_space<vmem>>, %arg3: memref<32x128xf32, #tpu.memory_space<vmem>>, %arg4: memref<8x128xf32, #tpu.memory_space<vmem>>) attributes {dimension_semantics = [#tpu.dimension_semantics<parallel>], iteration_bounds = array<i64: 2>, scalar_prefetch = 1 : i64, scratch_operands = 0 : i64, tpu.core_type = #tpu.core_type<tc>, window_params = [{pipeline_mode = #tpu.pipeline_mode<synchronous>, transform_indices = @transform_0, window_bounds = array<i64: 8, 128>}, {pipeline_mode = #tpu.pipeline_mode<synchronous>, transform_indices = @transform_1, window_bounds = array<i64: 32, 128>}, {transform_indices = @transform_2, window_bounds = array<i64: 8, 128>}]} {
    %c8_i32 = arith.constant 8 : i32
    %0 = arith.muli %arg0, %c8_i32 : i32
    %c0_i32 = arith.constant 0 : i32
    %1 = arith.addi %0, %c0_i32 : i32
    %2 = arith.index_cast %1 : i32 to index
    %3 = memref.load %arg1[%2] : memref<16xi32, #tpu.memory_space<smem>>
    %4 = arith.index_cast %3 : i32 to index
    %c0 = arith.constant 0 : index
    %5 = vector.load %arg3[%4, %c0] : memref<32x128xf32, #tpu.memory_space<vmem>>, vector<1x128xf32>
    %c0_0 = arith.constant 0 : index
    %c0_1 = arith.constant 0 : index
    %6 = vector.load %arg4[%c0_0, %c0_1] : memref<8x128xf32, #tpu.memory_space<vmem>>, vector<1x128xf32>
    tpu.vector_store %arg4[%c0_0, %c0_1], %5 {strides = array<i32>} : memref<8x128xf32, #tpu.memory_space<vmem>>, vector<1x128xf32>,
    %c1_i32 = arith.constant 1 : i32
    %7 = arith.addi %0, %c1_i32 : i32
    %8 = arith.index_cast %7 : i32 to index
    %9 = memref.load %arg1[%8] : memref<16xi32, #tpu.memory_space<smem>>
    %10 = arith.index_cast %9 : i32 to index
    %c0_2 = arith.constant 0 : index
    %11 = vector.load %arg3[%10, %c0_2] : memref<32x128xf32, #tpu.memory_space<vmem>>, vector<1x128xf32>
    %c1 = arith.constant 1 : index
    %c0_3 = arith.constant 0 : index
    %12 = vector.load %arg4[%c1, %c0_3] : memref<8x128xf32, #tpu.memory_space<vmem>>, vector<1x128xf32>
    tpu.vector_store %arg4[%c1, %c0_3], %11 {strides = array<i32>} : memref<8x128xf32, #tpu.memory_space<vmem>>, vector<1x128xf32>,
    %c2_i32 = arith.constant 2 : i32
    %13 = arith.addi %0, %c2_i32 : i32
    %14 = arith.index_cast %13 : i32 to index
    %15 = memref.load %arg1[%14] : memref<16xi32, #tpu.memory_space<smem>>
    %16 = arith.index_cast %15 : i32 to index
    %c0_4 = arith.constant 0 : index
    %17 = vector.load %arg3[%16, %c0_4] : memref<32x128xf32, #tpu.memory_space<vmem>>, vector<1x128xf32>
    %c2 = arith.constant 2 : index
    %c0_5 = arith.constant 0 : index
    %18 = vector.load %arg4[%c2, %c0_5] : memref<8x128xf32, #tpu.memory_space<vmem>>, vector<1x128xf32>
    tpu.vector_store %arg4[%c2, %c0_5], %17 {strides = array<i32>} : memref<8x128xf32, #tpu.memory_space<vmem>>, vector<1x128xf32>,
    %c3_i32 = arith.constant 3 : i32
    %19 = arith.addi %0, %c3_i32 : i32
    %20 = arith.index_cast %19 : i32 to index
    %21 = memref.load %arg1[%20] : memref<16xi32, #tpu.memory_space<smem>>
    %22 = arith.index_cast %21 : i32 to index
    %c0_6 = arith.constant 0 : index
    %23 = vector.load %arg3[%22, %c0_6] : memref<32x128xf32, #tpu.memory_space<vmem>>, vector<1x128xf32>
    %c3 = arith.constant 3 : index
    %c0_7 = arith.constant 0 : index
    %24 = vector.load %arg4[%c3, %c0_7] : memref<8x128xf32, #tpu.memory_space<vmem>>, vector<1x128xf32>
    tpu.vector_store %arg4[%c3, %c0_7], %23 {strides = array<i32>} : memref<8x128xf32, #tpu.memory_space<vmem>>, vector<1x128xf32>,
    %c4_i32 = arith.constant 4 : i32
    %25 = arith.addi %0, %c4_i32 : i32
    %26 = arith.index_cast %25 : i32 to index
    %27 = memref.load %arg1[%26] : memref<16xi32, #tpu.memory_space<smem>>
    %28 = arith.index_cast %27 : i32 to index
    %c0_8 = arith.constant 0 : index
    %29 = vector.load %arg3[%28, %c0_8] : memref<32x128xf32, #tpu.memory_space<vmem>>, vector<1x128xf32>
    %c4 = arith.constant 4 : index
    %c0_9 = arith.constant 0 : index
    %30 = vector.load %arg4[%c4, %c0_9] : memref<8x128xf32, #tpu.memory_space<vmem>>, vector<1x128xf32>
    tpu.vector_store %arg4[%c4, %c0_9], %29 {strides = array<i32>} : memref<8x128xf32, #tpu.memory_space<vmem>>, vector<1x128xf32>,
    %c5_i32 = arith.constant 5 : i32
    %31 = arith.addi %0, %c5_i32 : i32
    %32 = arith.index_cast %31 : i32 to index
    %33 = memref.load %arg1[%32] : memref<16xi32, #tpu.memory_space<smem>>
    %34 = arith.index_cast %33 : i32 to index
    %c0_10 = arith.constant 0 : index
    %35 = vector.load %arg3[%34, %c0_10] : memref<32x128xf32, #tpu.memory_space<vmem>>, vector<1x128xf32>
    %c5 = arith.constant 5 : index
    %c0_11 = arith.constant 0 : index
    %36 = vector.load %arg4[%c5, %c0_11] : memref<8x128xf32, #tpu.memory_space<vmem>>, vector<1x128xf32>
    tpu.vector_store %arg4[%c5, %c0_11], %35 {strides = array<i32>} : memref<8x128xf32, #tpu.memory_space<vmem>>, vector<1x128xf32>,
    %c6_i32 = arith.constant 6 : i32
    %37 = arith.addi %0, %c6_i32 : i32
    %38 = arith.index_cast %37 : i32 to index
    %39 = memref.load %arg1[%38] : memref<16xi32, #tpu.memory_space<smem>>
    %40 = arith.index_cast %39 : i32 to index
    %c0_12 = arith.constant 0 : index
    %41 = vector.load %arg3[%40, %c0_12] : memref<32x128xf32, #tpu.memory_space<vmem>>, vector<1x128xf32>
    %c6 = arith.constant 6 : index
    %c0_13 = arith.constant 0 : index
    %42 = vector.load %arg4[%c6, %c0_13] : memref<8x128xf32, #tpu.memory_space<vmem>>, vector<1x128xf32>
    tpu.vector_store %arg4[%c6, %c0_13], %41 {strides = array<i32>} : memref<8x128xf32, #tpu.memory_space<vmem>>, vector<1x128xf32>,
    %c7_i32 = arith.constant 7 : i32
    %43 = arith.addi %0, %c7_i32 : i32
    %44 = arith.index_cast %43 : i32 to index
    %45 = memref.load %arg1[%44] : memref<16xi32, #tpu.memory_space<smem>>
    %46 = arith.index_cast %45 : i32 to index
    %c0_14 = arith.constant 0 : index
    %47 = vector.load %arg3[%46, %c0_14] : memref<32x128xf32, #tpu.memory_space<vmem>>, vector<1x128xf32>
    %c7 = arith.constant 7 : index
    %c0_15 = arith.constant 0 : index
    %48 = vector.load %arg4[%c7, %c0_15] : memref<8x128xf32, #tpu.memory_space<vmem>>, vector<1x128xf32>
    tpu.vector_store %arg4[%c7, %c0_15], %47 {strides = array<i32>} : memref<8x128xf32, #tpu.memory_space<vmem>>, vector<1x128xf32>,
    %c1_i32_16 = arith.constant 1 : i32
    %c0_i32_17 = arith.constant 0 : i32
    %49 = arith.cmpi eq, %c1_i32_16, %c0_i32_17 : i32
    %c1_i32_18 = arith.constant 1 : i32
    %50 = arith.select %49, %c1_i32_18, %c1_i32_16 : i32
    %51 = arith.remsi %arg0, %50 : i32
    %c0_i32_19 = arith.constant 0 : i32
    %52 = arith.cmpi ne, %51, %c0_i32_19 : i32
    %c0_i32_20 = arith.constant 0 : i32
    %53 = arith.cmpi slt, %51, %c0_i32_20 : i32
    %c0_i32_21 = arith.constant 0 : i32
    %54 = arith.cmpi slt, %50, %c0_i32_21 : i32
    %55 = arith.xori %53, %54 : i1
    %56 = arith.andi %55, %52 : i1
    %57 = arith.addi %51, %50 : i32
    %58 = arith.select %56, %57, %51 : i32
    %c8_i32_22 = arith.constant 8 : i32
    %59 = arith.muli %58, %c8_i32_22 : i32
    %60 = tpu.assume_multiple %59, 8 : i32
    %c0_23 = arith.constant 0 : index
    %c0_24 = arith.constant 0 : index
    %61 = vector.load %arg4[%c0_23, %c0_24] : memref<8x128xf32, #tpu.memory_space<vmem>>, vector<8x128xf32>
    %62 = arith.index_cast %60 : i32 to index
    %c0_25 = arith.constant 0 : index
    %63 = vector.load %arg2[%62, %c0_25] : memref<8x128xf32, #tpu.memory_space<vmem>>, vector<8x128xf32>
    %64 = arith.addf %61, %63 : vector<8x128xf32>
    %c0_26 = arith.constant 0 : index
    %c0_27 = arith.constant 0 : index
    %65 = vector.load %arg4[%c0_26, %c0_27] : memref<8x128xf32, #tpu.memory_space<vmem>>, vector<8x128xf32>
    tpu.vector_store %arg4[%c0_26, %c0_27], %64 {strides = array<i32>} : memref<8x128xf32, #tpu.memory_space<vmem>>, vector<8x128xf32>,
    return
  }
  func.func @transform_0(%arg0: i32, %arg1: memref<16xi32, #tpu.memory_space<smem>>) -> (i32, i32) {
    %c0_i32 = arith.constant 0 : i32
    %c0_i32_0 = arith.constant 0 : i32
    %c0_i32_1 = arith.constant 0 : i32
    return %c0_i32, %c0_i32_0 : i32, i32
  }
  func.func @transform_1(%arg0: i32, %arg1: memref<16xi32, #tpu.memory_space<smem>>) -> (i32, i32) {
    %c0_i32 = arith.constant 0 : i32
    %c0_i32_0 = arith.constant 0 : i32
    %c0_i32_1 = arith.constant 0 : i32
    return %c0_i32, %c0_i32_0 : i32, i32
  }
  func.func @transform_2(%arg0: i32, %arg1: memref<16xi32, #tpu.memory_space<smem>>) -> (i32, i32) {
    %c0_i32 = arith.constant 0 : i32
    %c0_i32_0 = arith.constant 0 : i32
    return %arg0, %c0_i32 : i32, i32
  }
}

</mosaic_0001>

<bundles_post_ra>
// kernel: tpu_custom_call.1
= control target key start
LH: loop header
LB: loop body
LE: loop exit
PB: predicated region body
PF: predicated region fallthrough
CT: control target
= control target key end

     0   :  { %s498_s12 = smov [#allocation3]   ;;  %s668_s0 = inlined_call_operand.hbm [shape: s32[16], index: 0, kind: input, shape index: {}]   ;;  %s669_s1 = inlined_call_operand.hbm [shape: f32[8,128], index: 1, kind: input, shape index: {}]   ;;  %s670_s2 = inlined_call_operand.hbm [shape: f32[32,128], index: 2, kind: input, shape index: {}]   ;;  %s671_s3 = inlined_call_operand.hbm [shape: f32[16,128], index: 3, kind: output, shape index: {}]  }
   0x1   :  { %9 = dma.hbm_to_smem %s668_s0, 16, %s498_s12, [#allocation2] }
   0x2   :  { %468 = dma.done.wait [#allocation2], 16 }
   0x3   :  { %469 = vsyncadd [#allocation2], 4294967280 }
   0x4   :  { %11 = sfence }
   0x5   :  { %12 = vsyncpa [#allocation5], 0 }
   0x6   :  { %13 = vsyncpa [#allocation8], 0 }
   0x7   :  { %14 = vsyncpa [#allocation6], 0 }
   0x8   :  { %16 = vsyncpa [#allocation6 + $0x1], 0  ;;  %s527_s15 = smov 0   ;;  %s529_s16 = smov 0  }
   0x9   :  { %s531_s17 = smov 0   ;;  %s533_s18 = smov 0  }
   0xa LB: > { %s548_s0 = sadd.s32 4294967295, %s496_s18   ;;  %s290_s19 = sadd.s32 4294967294, %s496_s18   ;;  %s496_s18 = sphi %s533_s18, %s689_s18   ;;  %s492_s17 = sphi %s531_s17, %s688_s17   ;;  %s488_s16 = sphi %s529_s16, %s687_s16   ;;  %s484_s15 = sphi %s527_s15, %s686_s15  }
   0xb   : > { %s552_s20 = sadd.s32 1, %s496_s18   ;;  %s71_s21 = sadd.s32 1, %s492_s17 }
   0xc   : > { %s68_s22 = ssub.s32 %s496_s18, %s552_s20  ;;  %p81_p0 = scmp.ne.s32.totalorder %s492_s17, %s488_s16 }
   0xd   : > { %p69_p1 = scmp.eq.s32.totalorder %s68_s22, 0  ;;  %p82_p2 = scmp.eq.s32.totalorder %s548_s0, 1 }
   0xe   : > { %p87_p3 = scmp.ne.s32.totalorder %s488_s16, %s484_s15  ;;  %p88_p4 = scmp.eq.s32.totalorder %s290_s19, 1 }
   0xf   : > { %s563_s23 = scalar_select %p69_p1, %s492_s17, %s71_s21  }
  0x10   : > { %p565_p5 = por %p82_p2, %p81_p0  ;;  %p569_p6 = por %p88_p4, %p87_p3 }
  0x11   : > { %p291_p7 = scmp.ge.s32.totalorder %s496_s18, 1  ;;  %p95_p8 = scmp.lt.s32.totalorder %s496_s18, 3 }
  0x12   : > { %s675_s24 = scalar_select %p565_p5, 1, 0 }
  0x13   : > { %s676_s25 = scalar_select %p569_p6, 1, 0 }
  0x14   : > { %p672_p9 = scmp.eq.s32.totalorder %s548_s0, 0  ;;  %p576_p10 = pnand %p291_p7, %p95_p8 }
  0x15   : > { %s499_s27 = smov [#allocation4]   ;;  %s500_s29 = smov [#allocation7]  }
  0x16   : > { %s677_s26 = scalar_select %p576_p10, 1, 0 }
  0x17   : > { %s108_s28 = sshll.u32 %s499_s27, 4  ;;  %p313_p11 = pneg %p576_p10  ;;  %s109_s28 = int_to_ptr.vmem [resolvable:$true] %s108_s28 }
  0x18   : > { %s118_s30 = sshll.u32 %s500_s29, 4  ;;  %s385_s5 = scalar_lea.vmem %s109_s28, 128  ;;  %s119_s30 = int_to_ptr.vmem [resolvable:$true] %s118_s30 }
  0x19   : > { %p584_p12 = pnand %p672_p9, %p313_p11  ;;  %p386_p0 = scmp.ne.s32.totalorder %s109_s28, %s385_s5 }
  0x1a   : > { %p393_p3 = scmp.lt.s32.totalorder %s109_s28, %s109_s28  ;;  %p394_p4 = scmp.lt.s32.totalorder %s385_s5, %s385_s5 }
  0x1b   : > { %p376_p13 = pneg %p584_p12 }
  0x1c   : > { %p395_p7 = por %p394_p4, %p393_p3 }
  0x1d   : > { %p388_p1 = pnand %p386_p0, %p376_p13 }
  0x1f   : > { %p389_p2 = pneg %p388_p1 }
  0x21   : > { %p396_p8 = pnand %p395_p7, %p389_p2 }
  0x23   : > { %399 = shalt.err (!%p396_p8)
}
  0x24   : > { %316 = dma.hbm_to_vmem [thread:$0]  (!%p584_p12), %s669_s1, 128, %s109_s28, [#allocation5]  }
  0x25   : > { %s411_s8 = scalar_lea.vmem %s119_s30, 512  ;;  %p419_p0 = scmp.lt.s32.totalorder %s119_s30, %s119_s30 }
  0x26   : > { %p412_p11 = scmp.ne.s32.totalorder %s119_s30, %s411_s8  ;;  %p420_p1 = scmp.lt.s32.totalorder %s411_s8, %s411_s8 }
  0x28   : > { %p414_p9 = pnand %p412_p11, %p376_p13  ;;  %p421_p5 = por %p420_p1, %p419_p0 }
  0x2a   : > { %p415_p6 = pneg %p414_p9 }
  0x2c   : > { %p422_p10 = pnand %p421_p5, %p415_p6 }
  0x2e   : > { %425 = shalt.err (!%p422_p10)
}
  0x2f   : > { %s501_s9 = smov 128   ;;  %s502_s10 = smov 8  }
  0x30   : > { %319 = dma.hbm_to_vmem [thread:$0]  (!%p584_p12), %s670_s2, 512, %s119_s30, [#allocation8], %s501_s9, %s501_s9, %s502_s10  }
  0x31   : > { %p679_p2 = scmp.ne.s32.totalorder %s677_s26, 0 }
  0x32   : > { %p680_p3 = scmp.eq.s32.totalorder (!%p679_p2), %s548_s0, 0 }
  0x33   : > { %134 = sbr.rel (%p679_p2) target bundleno = 101 (0x65), region = 28 }
  0x38   : > { %471 = dma.done.wait (%p680_p3), [#allocation5], 128   ;;  %p681_p9 = pmov %p680_p3 }
  0x39   : > { %p682_p5 = pmov %p680_p3 }
  0x3a   : > { %473 = vsyncadd (%p681_p9), [#allocation5], 4294967168 }
  0x3b   : > { %475 = dma.done.wait (%p682_p5), [#allocation8], 512   ;;  %p683_p6 = pmov %p680_p3 }
  0x3c   : > { %s152_s13 = sand.u32 1, %s488_s16   ;;  %s298_s14 = sshll.u32 %s548_s0, 3  ;;  %v196_v8 = vld [vmem:[#allocation4] sm:$0xff] }
  0x3d   : > { %477 = vsyncadd (%p683_p6), [#allocation8], 4294966784  ;;  %s297_s19 = sshll.u32 %s152_s13, 3  ;;  %s156_s21 = sld [smem:[#allocation3 + %s298_s14]] }
  0x3e   : > { %s160_s22 = sadd.s32 1, %s298_s14  ;;  %s165_s27 = sadd.s32 2, %s298_s14 }
  0x3f   : > { %s161_s26 = sld [smem:[#allocation3 + %s160_s22]]  ;;  %s170_s29 = sadd.s32 3, %s298_s14 }
  0x40   : > { %s166_s28 = sld [smem:[#allocation3 + %s165_s27]]  ;;  %s175_s4 = sadd.s32 4, %s298_s14 }
  0x41   : > { %s171_s30 = sld [smem:[#allocation3 + %s170_s29]]  ;;  %s180_s6 = sadd.s32 5, %s298_s14 }
  0x42   : > { %s176_s5 = sld [smem:[#allocation3 + %s175_s4]]  ;;  %s185_s9 = sadd.s32 6, %s298_s14 }
  0x43   : > { %s181_s7 = sld [smem:[#allocation3 + %s180_s6]]  ;;  %s157_s8 = scalar_lea.vmem [#allocation7], %s156_s21 }
  0x44   : > { %v158_v0 = vld [vmem:[%s157_s8] sm:$0x1]  ;;  %s190_s10 = sadd.s32 7, %s298_s14  ;;  %s620_s11 = scalar_lea.vmem [#allocation9], %s297_s19 }
  0x45   : > { %159 = vst [vmem:[%s620_s11] sm:$0x1] %v158_v0  ;;  %s186_s12 = sld [smem:[#allocation3 + %s185_s9]]  ;;  %s162_s22 = scalar_lea.vmem [#allocation7], %s161_s26 }
  0x46   : > { %v163_v1 = vld [vmem:[%s162_s22] sm:$0x1]  ;;  %s191_s27 = sld [smem:[#allocation3 + %s190_s10]]  ;;  %s167_s29 = scalar_lea.vmem [#allocation7], %s166_s28 }
  0x47   : > { %164 = vst [vmem:[%s620_s11 + $0x1] sm:$0x1] %v163_v1  ;;  %v168_v2 = vld [vmem:[%s167_s29] sm:$0x1]  ;;  %s172_s14 = scalar_lea.vmem [#allocation7], %s171_s30  ;;  %s300_s30 = sshll.u32 %s548_s0, 7 }
  0x48   : > { %169 = vst [vmem:[%s620_s11 + $0x2] sm:$0x1] %v168_v2  ;;  %v173_v3 = vld [vmem:[%s172_s14] sm:$0x1]  ;;  %s177_s19 = scalar_lea.vmem [#allocation7], %s176_s5  ;;  %s213_s4 = sshll.u32 %s620_s11, 4  ;;  %s214_s4 = int_to_ptr.vmem [resolvable:$true] %s213_s4 }
  0x49   : > { %174 = vst [vmem:[%s620_s11 + $0x3] sm:$0x1] %v173_v3  ;;  %v178_v4 = vld [vmem:[%s177_s19] sm:$0x1]  ;;  %s182_s21 = scalar_lea.vmem [#allocation7], %s181_s7  ;;  %s211_s7 = scalar_lea.hbm %s671_s3, %s300_s30 }
  0x4a   : > { %179 = vst [vmem:[%s620_s11 + $0x4] sm:$0x1] %v178_v4  ;;  %v183_v5 = vld [vmem:[%s182_s21] sm:$0x1]  ;;  %s200_s8 = scalar_lea.sflag [#allocation6], %s152_s13  ;;  %s426_s9 = scalar_lea.vmem %s214_s4, 128 }
  0x4b   : > { %184 = vst [vmem:[%s620_s11 + $0x5] sm:$0x1] %v183_v5  ;;  %s187_s26 = scalar_lea.vmem [#allocation7], %s186_s12  ;;  %p427_p10 = scmp.ne.s32.totalorder %s214_s4, %s426_s9 }
  0x4c   : > { %v188_v6 = vld [vmem:[%s187_s26] sm:$0x1]  ;;  %s192_s28 = scalar_lea.vmem [#allocation7], %s191_s27  ;;  %p684_p12 = scmp.ne.s32.totalorder %s675_s24, 0 }
  0x4d   : > { %189 = vst [vmem:[%s620_s11 + $0x6] sm:$0x1] %v188_v6  ;;  %v193_v7 = vld [vmem:[%s192_s28] sm:$0x1]  ;;  %s503_s10 = smov [#allocation9]  }
  0x4e   : > { %194 = vst [vmem:[%s620_s11 + $0x7] sm:$0x1] %v193_v7  ;;  %p428_p13 = pnand %p427_p10, %p684_p12  ;;  %s430_s12 = sshll.u32 %s503_s10, 4  ;;  %s431_s12 = int_to_ptr.vmem [resolvable:$false] %s430_s12 }
  0x4f   : > { %s432_s0 = scalar_lea.vmem %s431_s12, 256  ;;  %p433_p7 = scmp.lt.s32.totalorder %s214_s4, %s431_s12 }
  0x50   : > { %p429_p4 = pneg %p428_p13  ;;  %p434_p8 = scmp.lt.s32.totalorder %s432_s0, %s426_s9 }
  0x52   : > { %p435_p11 = por %p434_p8, %p433_p7 }
  0x54   : > { %p436_p0 = pnand %p435_p11, %p429_p4 }
  0x55   : > { %v195_v9 = vld [vmem:[%s620_s11] sm:$0xff] }
  0x56   : > { %v197_v10 = vadd.f32 %v196_v8, %v195_v9 }
  0x58   : > { %198 = vst [vmem:[%s620_s11] sm:$0xff] %v197_v10 }
  0x59   : > { %439 = shalt.err (!%p436_p0)
}
  0x5a   : > { %s440_s22 = scalar_lea.hbm %s211_s7, 128  ;;  %s444_s27 = scalar_lea.hbm %s671_s3, 256 }
  0x5b   : > { %p441_p1 = scmp.ne.s32.totalorder %s211_s7, %s440_s22  ;;  %p445_p9 = scmp.lt.s32.totalorder %s211_s7, %s671_s3 }
  0x5c   : > { %p446_p5 = scmp.lt.s32.totalorder %s444_s27, %s440_s22 }
  0x5d   : > { %p442_p2 = pnand %p441_p1, %p684_p12 }
  0x5e   : > { %p447_p6 = por %p446_p5, %p445_p9 }
  0x5f   : > { %p443_p3 = pneg %p442_p2 }
  0x61   : > { %p448_p10 = pnand %p447_p6, %p443_p3 }
  0x63   : > { %451 = shalt.err (!%p448_p10)
}
  0x64   : > { %311 = dma.vmem_to_hbm [thread:$0]  (%p684_p12), %s214_s4, 128, %s211_s7, %s200_s8  }
  0x65 PF: > { %p328_p13 = scmp.ge.s32.totalorder %s496_s18, 2  ;;  %s225_s19 = sand.u32 1, %s484_s15  }
  0x66   : > { %p685_p4 = scmp.ne.s32.totalorder %s676_s25, 0  ;;  %s226_s21 = scalar_lea.sflag [#allocation6], %s225_s19 }
  0x68   : > { %p321_p7 = pnand %p328_p13, %p685_p4 }
  0x6a   : > { %p322_p8 = pneg %p321_p7 }
  0x6c   : > { %479 = dma.done.wait (%p322_p8), %s226_s21, 128  }
  0x6d   : > { %481 = vsyncadd (%p322_p8), %s226_s21, 4294967168  ;;  %p19_p11 = scmp.ge.s32.totalorder %s552_s20, 4   ;;  %s686_s15 = smov %s488_s16 }
  0x6e   : > { %s687_s16 = smov %s492_s17  ;;  %s688_s17 = smov %s563_s23 }
  0x6f   : > { %s689_s18 = smov %s552_s20  ;;  %21 = sbr.rel (!%p19_p11) target bundleno = 10 (0xa), region = 77 }
  0x74   :  { %231 = vsyncpa [#allocation5], 1 }
  0x75   :  { %233 = vsyncpa [#allocation5 + $0x1], 1 }
  0x76   :  { %234 = vsyncpa [#allocation8], 1 }
  0x77   :  { %235 = vsyncpa [#allocation6], 1 }
  0x78   :  { %237 = vsyncpa [#allocation6 + $0x1], 1 }

</bundles_post_ra>
